<compile_context>
chip_gen: v6e
topology: v6e:2x2x1
jax: 0.10.0
libtpu: 0.0.40
codegen_flags: <defaults>
</compile_context>

<pallas_src>
import jax
import jax.numpy as jnp
from jax.experimental import pallas as pl
from jax.experimental.pallas import tpu as pltpu

_MIB = 1024 * 1024


def _normalize_kernel(x_ref, stats_ref, o_ref):
    # x_ref:     (R, T) tile of the flattened (N*C, H*W) input
    # stats_ref: (R, 2) f32 -- column 0 = per-row mean, column 1 = per-row 1/std
    x = x_ref[...].astype(jnp.float32)
    stats = stats_ref[...]
    m = stats[:, 0:1]
    inv_s = stats[:, 1:2]
    # Pure VPU elementwise: subtract + multiply with a lane-only broadcast.
    o_ref[...] = ((x - m) * inv_s).astype(o_ref.dtype)


def _choose_tiles(rows, cols, itemsize, target_bytes=4 * _MIB):
    """Pick (R, T) block dims: lane-dense, (8,128)-legal, ~target_bytes each."""
    # Sub-32-bit dtypes pack along sublanes: keep R a multiple of the packed
    # sublane count so loads/stores stay unmasked and fully packed.
    sublane = {4: 8, 2: 16, 1: 32}.get(itemsize, 8)

    # Lane (minor) tile: full extent whenever a minimal-height block fits the
    # per-buffer budget (fully contiguous DMA rows, no lane-tail masking);
    # otherwise a large multiple of 128.
    if cols <= 8192 or cols * sublane * itemsize <= target_bytes:
        t = cols                                   # equal to full dim -> legal
    else:
        t = (target_bytes // (sublane * itemsize) // 128) * 128
        t = max(128, min(t, (cols // 128) * 128))  # multiple of 128 -> legal

    # Row (second-minor) tile: fill the per-buffer budget, keep legality.
    r = max(1, target_bytes // max(1, t * itemsize))
    if rows <= sublane:
        r = rows                                   # equal to full dim -> legal
    else:
        r = min(r, rows)
        r = max(sublane, (r // sublane) * sublane)  # multiple of sublane -> legal

    # v7x megacore: for non-trivial sizes make sure the row axis has >= 2
    # parallel blocks so both TensorCores (and their HBM share) get work.
    total_bytes = rows * cols * itemsize
    if r >= rows and rows >= 2 * sublane and total_bytes >= _MIB:
        half = ((rows // 2) // sublane) * sublane
        r = max(sublane, min(r, half))

    return int(r), int(t)


def normalize_by_channel_mean_std(x, mean, std):
    """(x - mean[None,:,None,None]) / std[None,:,None,None] on NCHW input."""
    n, c, h, w = x.shape
    hw = h * w
    rows = n * c

    # Lane-dense view of the data: one row per (n, c) pair.
    x2 = x.reshape(rows, hw)

    # Normalization constants in f32; reciprocal computed once (C values),
    # then fused with mean into a single (rows, 2) side stream so the in-kernel
    # broadcast is lane-only.  std == 0 yields inf/nan like the PyTorch ref.
    # TODO(synk): PyTorch type promotion would return f32 for half/bf16 inputs
    # against its f32 buffers; here the output keeps x.dtype.
    mean_f32 = jnp.asarray(mean, jnp.float32).reshape(-1)
    std_f32 = jnp.asarray(std, jnp.float32).reshape(-1)
    inv_std_f32 = 1.0 / std_f32
    stats = jnp.stack([mean_f32, inv_std_f32], axis=-1)        # (C, 2)
    stats_rows = jnp.tile(stats, (n, 1))                       # (N*C, 2)

    itemsize = jnp.dtype(x.dtype).itemsize
    r, t = _choose_tiles(rows, hw, itemsize)
    grid = (pl.cdiv(rows, r), pl.cdiv(hw, t))

    # VMEM budget derived from the chosen tiles: double-buffered in + out
    # blocks plus the (lane-padded) stats stream, with margin.  Floor at the
    # 32 MiB scoped default, cap at 64 MiB (v7x physical VMEM).
    block_bytes = r * t * itemsize
    stats_bytes = r * 128 * 4                    # (r, 2) pads lanes to 128
    vmem_limit = 2 * 2 * block_bytes + 2 * stats_bytes + 4 * _MIB
    vmem_limit = int(min(64 * _MIB, max(32 * _MIB, vmem_limit)))

    out2 = pl.pallas_call(
        _normalize_kernel,
        out_shape=jax.ShapeDtypeStruct((rows, hw), x.dtype),
        grid_spec=pltpu.PrefetchScalarGridSpec(
            num_scalar_prefetch=0,
            grid=grid,
            in_specs=[
                pl.BlockSpec((r, t), lambda i, j: (i, j)),
                pl.BlockSpec((r, 2), lambda i, j: (i, 0)),
            ],
            out_specs=pl.BlockSpec((r, t), lambda i, j: (i, j)),
        ),
        compiler_params=pltpu.CompilerParams(
            dimension_semantics=("parallel", "parallel"),
            vmem_limit_bytes=vmem_limit,
        ),
    )(x2, stats_rows)

    return out2.reshape(n, c, h, w)


if __name__ == "__main__":
    key = jax.random.PRNGKey(0)
    kx, km, ks = jax.random.split(key, 3)

    N, C, H, W = 2, 4, 16, 16
    x = jax.random.normal(kx, (N, C, H, W), dtype=jnp.float32)

    # Deterministic per-channel buffers (like the registered mean/std buffers).
    mean = jax.random.normal(km, (C,), dtype=jnp.float32) * 0.5
    std = jax.random.uniform(ks, (C,), dtype=jnp.float32, minval=0.5, maxval=1.5)

    out = normalize_by_channel_mean_std(x, mean, std)
    out = jax.block_until_ready(out)

    # Reference check against plain JAX broadcasting semantics.
    ref = (x - mean[None, :, None, None]) / std[None, :, None, None]
    assert jnp.allclose(out, ref, atol=1e-5, rtol=1e-5), "mismatch vs reference"

    print("KERNEL_OK")
</pallas_src>

<mosaic_0001>
module attributes {stable_mosaic.version = 11 : i64} {
  func.func @_normalize_kernel(%arg0: i32, %arg1: i32, %arg2: memref<8x256xf32, #tpu.memory_space<vmem>>, %arg3: memref<8x2xf32, #tpu.memory_space<vmem>>, %arg4: memref<8x256xf32, #tpu.memory_space<vmem>>) attributes {dimension_semantics = [#tpu.dimension_semantics<parallel>, #tpu.dimension_semantics<parallel>], iteration_bounds = array<i64: 1, 1>, scalar_prefetch = 0 : i64, scratch_operands = 0 : i64, tpu.core_type = #tpu.core_type<tc>, window_params = [{transform_indices = @transform_0, window_bounds = array<i64: 8, 256>}, {transform_indices = @transform_1, window_bounds = array<i64: 8, 2>}, {transform_indices = @transform_2, window_bounds = array<i64: 8, 256>}]} {
    %c0 = arith.constant 0 : index
    %c0_0 = arith.constant 0 : index
    %0 = vector.load %arg2[%c0, %c0_0] : memref<8x256xf32, #tpu.memory_space<vmem>>, vector<8x256xf32>
    %c0_1 = arith.constant 0 : index
    %c0_2 = arith.constant 0 : index
    %1 = vector.load %arg3[%c0_1, %c0_2] : memref<8x2xf32, #tpu.memory_space<vmem>>, vector<8x2xf32>
    %2 = vector.extract_strided_slice %1 {offsets = [0, 0], sizes = [8, 1], strides = [1, 1]} : vector<8x2xf32> to vector<8x1xf32>
    %3 = vector.extract_strided_slice %1 {offsets = [0, 1], sizes = [8, 1], strides = [1, 1]} : vector<8x2xf32> to vector<8x1xf32>
    %4 = vector.broadcast %2 : vector<8x1xf32> to vector<8x256xf32>
    %5 = arith.subf %0, %4 : vector<8x256xf32>
    %6 = vector.broadcast %3 : vector<8x1xf32> to vector<8x256xf32>
    %7 = arith.mulf %5, %6 : vector<8x256xf32>
    %c0_3 = arith.constant 0 : index
    %c0_4 = arith.constant 0 : index
    %8 = vector.load %arg4[%c0_3, %c0_4] : memref<8x256xf32, #tpu.memory_space<vmem>>, vector<8x256xf32>
    tpu.vector_store %arg4[%c0_3, %c0_4], %7 {strides = array<i32>} : memref<8x256xf32, #tpu.memory_space<vmem>>, vector<8x256xf32>,
    return
  }
  func.func @transform_0(%arg0: i32, %arg1: i32) -> (i32, i32) {
    %c0_i32 = arith.constant 0 : i32
    return %arg0, %arg1 : i32, i32
  }
  func.func @transform_1(%arg0: i32, %arg1: i32) -> (i32, i32) {
    %c0_i32 = arith.constant 0 : i32
    %c0_i32_0 = arith.constant 0 : i32
    return %arg0, %c0_i32 : i32, i32
  }
  func.func @transform_2(%arg0: i32, %arg1: i32) -> (i32, i32) {
    %c0_i32 = arith.constant 0 : i32
    return %arg0, %arg1 : i32, i32
  }
}

</mosaic_0001>

<bundles_post_ra>
// kernel: tpu_custom_call.1
= control target key start
LH: loop header
LB: loop body
LE: loop exit
PB: predicated region body
PF: predicated region fallthrough
CT: control target
= control target key end

     0   :  { %7 = vsyncpa [#allocation3], 0  ;;  %s135_s0 = inlined_call_operand.hbm [shape: f32[8,256], index: 0, kind: input, shape index: {}]   ;;  %s136_s1 = inlined_call_operand.vmem [shape: f32[8,2], index: 1, kind: input, shape index: {}]   ;;  %s137_s2 = inlined_call_operand.hbm [shape: f32[8,256], index: 2, kind: output, shape index: {}]  }
   0x1   :  { %8 = vsyncpa [#allocation4], 0  ;;  %s107_s9 = smov [#allocation2]  }
   0x2   :  { %s15_s10 = sshll.u32 %s107_s9, 4  ;;  %s16_s10 = int_to_ptr.vmem [resolvable:$true] %s15_s10 }
   0x3   :  { %s71_s11 = scalar_lea.vmem %s16_s10, 256  ;;  %p76_p1 = scmp.lt.s32.totalorder %s16_s10, %s16_s10 }
   0x4   :  { %p72_p0 = scmp.ne.s32.totalorder %s16_s10, %s71_s11  ;;  %p77_p2 = scmp.lt.s32.totalorder %s71_s11, %s71_s11 }
   0x6   :  { %p78_p3 = por %p77_p2, %p76_p1 }
   0x8   :  { %p79_p4 = pnand %p78_p3, %p72_p0 }
   0xa   :  { %82 = shalt.err (!%p79_p4)
}
   0xb   :  { %18 = dma.hbm_to_vmem [thread:$0]  %s135_s0, 256, %s16_s10, [#allocation3]  }
   0xc   :  { %103 = dma.done.wait [#allocation3], 256  }
   0xd   :  { %104 = vsyncadd [#allocation3], 4294967040  ;;  %v108_v0 = vmov 0   ;;  %v26_v1 = vld [vmem:[%s136_s1] sm:$0xff]  ;;  %v109_v2 = vmov 1   ;;  %v25_v5 = vld [vmem:[#allocation2 + $0x8] sm:$0xff] }
   0xe   :  { %61 = vset.pattern.permute.xlu0 %v108_v0  ;;  %v24_v4 = vld [vmem:[#allocation2] sm:$0xff]  ;;  %s110_s16 = smov [#allocation5]  }
   0xf   :  { %29 = vperm.xlu0 %61, %v26_v1   ;;  %s48_s17 = sshll.u32 %s110_s16, 4  ;;  %s49_s17 = int_to_ptr.vmem [resolvable:$true] %s48_s17 }
  0x10   :  { %s83_s0 = scalar_lea.vmem %s49_s17, 256  ;;  %p88_p6 = scmp.lt.s32.totalorder %s49_s17, %s49_s17 }
  0x11   :  { %p84_p5 = scmp.ne.s32.totalorder %s49_s17, %s83_s0  ;;  %p89_p7 = scmp.lt.s32.totalorder %s83_s0, %s83_s0 }
  0x13   :  { %62 = vset.pattern.permute.xlu0 %v109_v2  ;;  %p90_p8 = por %p89_p7, %p88_p6 }
  0x14   :  { %35 = vperm.xlu0 %62, %v26_v1  }
  0x15   :  { %p91_p9 = pnand %p90_p8, %p84_p5 }
  0x8a   :  { %v30_v3 = vpop.permute.xlu0 %29 }
  0x8b   :  { %v32_v6 = vsub.f32 %v24_v4, %v30_v3  ;;  %v33_v7 = vsub.f32 %v25_v5, %v30_v3 }
  0x8f   :  { %v36_v8 = vpop.permute.xlu0 %35 }
  0x90   :  { %v38_v9 = vmul.f32 %v36_v8, %v32_v6  ;;  %v39_v10 = vmul.f32 %v36_v8, %v33_v7 }
  0x92   :  { %40 = vst [vmem:[#allocation5] sm:$0xff] %v38_v9  ;;  %41 = vst [vmem:[#allocation5 + $0x8] sm:$0xff] %v39_v10 }
  0x93   :  { %94 = shalt.err (!%p91_p9)
}
  0x94   :  { %51 = dma.vmem_to_hbm [thread:$0]  %s49_s17, 256, %s137_s2, [#allocation4]  }
  0x95   :  { %105 = dma.done.wait [#allocation4], 256  }
  0x96   :  { %106 = vsyncadd [#allocation4], 4294967040 }
  0x97   :  { %55 = vsyncpa [#allocation3], 1 }
  0x98   :  { %56 = vsyncpa [#allocation4], 1 }

</bundles_post_ra>
